<compile_context>
chip_gen: v7x
topology: tpu7x:2x2x1
jax: 0.10.0
libtpu: 0.0.40
codegen_flags: <defaults>
</compile_context>

<pallas_src>
import jax
import jax.numpy as jnp
from jax.experimental import pallas as pl
from jax.experimental.pallas import tpu as pltpu

LANE = 128
ROW_ALIGN = 32     # covers f32 (8,128), bf16 (16,128) and int8/fp8 (32,128) tiles


def _cdiv(a: int, b: int) -> int:
    return -(-a // b)


def _round_up(x: int, m: int) -> int:
    return _cdiv(x, m) * m


def _num_tensorcores() -> int:
    """2 on v7x (2 TensorCores / chip), else 1 (v5e / v6e)."""
    try:
        kind = jax.devices()[0].device_kind.lower()
    except Exception:
        return 1
    return 2 if "v7" in kind else 1


def _l1_hinge_kernel(pred_ref, ev_ref, dur_ref, out_ref, acc_ref):
    # pred/ev/dur: (1, TR, 128) native dtype  -- one event, one dense row tile
    # out:         (1, 1, 1, 128) f32         -- per-(core, event) lane partial
    # acc:         (TR, 128) f32 scratch; grid axis 2 is the reduction axis
    i = pl.program_id(2)

    @pl.when(i == 0)
    def _init():
        acc_ref[...] = jnp.zeros_like(acc_ref)

    preds = pred_ref[0].astype(jnp.float32)
    durs = dur_ref[0].astype(jnp.float32)
    is_event = ev_ref[0] > 0.5          # compare in native dtype (no upcast)

    scores = durs - preds
    # hinge + abs fused: event rows -> |scores|; censored rows -> relu(scores)
    acc_ref[...] += jnp.where(is_event, jnp.abs(scores),
                              jnp.maximum(scores, 0.0))

    @pl.when(i == pl.num_programs(2) - 1)
    def _finalize():
        # one sublane reduce per (core, event); lane sum + weighting + 1/B are
        # finished in the tiny wrapper epilogue.
        out_ref[0, 0] = jnp.sum(acc_ref[...], axis=0, keepdims=True)


def l1_loss_hinge(predictions, references, weights, *, tr_max=None,
                  vmem_budget_bytes=20 * 1024 * 1024):
    """L1Loss(l1_type='hinge').forward.

    predictions: (B, E) float (f32 or bf16) -- predicted durations.
    references:  (B, 4E) packed [percentiles | events | fraction | durations].
    weights:     (E + 1,) importance weights (torch.ones(E + 1) by default).
    Returns a scalar f32 loss.
    """
    B, E = predictions.shape
    assert references.shape == (B, 4 * E)

    # ---- tile sizing with dense-block VMEM accounting -----------------------
    R = _cdiv(B, LANE)                               # rows of 128 per event
    in_itemsize = (jnp.dtype(predictions.dtype).itemsize
                   + 2 * jnp.dtype(references.dtype).itemsize)
    # bytes per (row of 128 lanes): double-buffered inputs + f32 acc row
    row_bytes = LANE * (2 * in_itemsize + 4)
    out_bytes = 2 * LANE * 4                         # double-buffered out block
    tr = (vmem_budget_bytes - out_bytes) // row_bytes
    tr = max(ROW_ALIGN, tr // ROW_ALIGN * ROW_ALIGN)
    if tr_max is not None:
        tr = min(tr, max(ROW_ALIGN, tr_max // ROW_ALIGN * ROW_ALIGN))
    tr = min(tr, _round_up(R, ROW_ALIGN))            # don't exceed what exists

    n_tiles = _cdiv(R, tr)
    ncore = 2 if (_num_tensorcores() >= 2 and n_tiles >= 2) else 1
    n_per_core = _cdiv(n_tiles, ncore)
    rows_pad = ncore * n_per_core * tr
    b_pad = rows_pad * LANE

    # ---- layout: per-event contiguous streams -> dense (E, rows, 128) slabs -
    # zero padding is exact for the hinge loss (dur = pred = 0 -> |score| = 0)
    def to_slab(x_eb):                               # (E, B) -> (E, rows, 128)
        x = jnp.pad(x_eb, ((0, 0), (0, b_pad - B)))
        return x.reshape(E, rows_pad, LANE)

    preds_s = to_slab(predictions.T)                 # keep native dtype
    evs_s = to_slab(references[:, E:2 * E].T)
    durs_s = to_slab(references[:, 3 * E:4 * E].T)

    data_map = lambda c, e, i: (e, c * n_per_core + i, 0)
    if ncore == 2:
        dims = (pltpu.CORE_PARALLEL, pltpu.ARBITRARY, pltpu.ARBITRARY)
    else:
        dims = (pltpu.ARBITRARY, pltpu.ARBITRARY, pltpu.ARBITRARY)

    partials = pl.pallas_call(
        _l1_hinge_kernel,
        out_shape=jax.ShapeDtypeStruct((ncore, E, 1, LANE), jnp.float32),
        grid_spec=pltpu.PrefetchScalarGridSpec(
            num_scalar_prefetch=0,
            grid=(ncore, E, n_per_core),
            in_specs=[
                pl.BlockSpec((1, tr, LANE), data_map),     # predictions
                pl.BlockSpec((1, tr, LANE), data_map),     # event indicators
                pl.BlockSpec((1, tr, LANE), data_map),     # durations
            ],
            out_specs=pl.BlockSpec((1, 1, 1, LANE),
                                   lambda c, e, i: (c, e, 0, 0)),
            scratch_shapes=[pltpu.VMEM((tr, LANE), jnp.float32)],
        ),
        compiler_params=pltpu.CompilerParams(
            dimension_semantics=dims,
            vmem_limit_bytes=32 * 1024 * 1024,
            allow_input_fusion=[True, True, True],
        ),
    )(preds_s, evs_s, durs_s)

    # tiny epilogue: per-event sums -> weights[event + 1] -> mean over TRUE B
    per_event = jnp.sum(partials, axis=(0, 2, 3))    # (E,)
    w = weights[1:].astype(jnp.float32)
    return jnp.sum(per_event * w) * (1.0 / B)


def _reference_l1_hinge(predictions, references, weights):
    """Pure-JAX reference mirroring the PyTorch semantics."""
    B, E = predictions.shape
    total = jnp.float32(0.0)
    for e in range(E):
        ev = references[:, E + e] > 0.5
        dur = references[:, 3 * E + e].astype(jnp.float32)
        pred = predictions[:, e].astype(jnp.float32)
        scores = dur - pred
        scores = jnp.where(ev, scores, jnp.maximum(scores, 0.0))
        total = total + weights[e + 1] * jnp.mean(jnp.abs(scores))
    return total


if __name__ == "__main__":
    # ---- config 1: module-sized example (batch=8, num_events=2, f32) --------
    num_events = 2
    batch = 8
    key = jax.random.PRNGKey(0)
    k1, k2, k3, k4, k5 = jax.random.split(key, 5)

    predictions = jax.random.uniform(k1, (batch, num_events), jnp.float32) * 10.0
    percentiles = jnp.floor(
        jax.random.uniform(k2, (batch, num_events), jnp.float32) * 4.0)
    events = (jax.random.uniform(k3, (batch, num_events), jnp.float32) > 0.5
              ).astype(jnp.float32)
    fraction = jax.random.uniform(k4, (batch, num_events), jnp.float32)
    durations = jax.random.uniform(k5, (batch, num_events), jnp.float32) * 12.0
    references = jnp.concatenate([percentiles, events, fraction, durations],
                                 axis=1)
    weights = jnp.ones((num_events + 1,), jnp.float32)   # torch.ones(E + 1)

    loss = jax.block_until_ready(l1_loss_hinge(predictions, references, weights))
    ref = _reference_l1_hinge(predictions, references, weights)
    assert jnp.allclose(loss, ref, rtol=1e-5, atol=1e-5), (loss, ref)

    # ---- config 2: ragged batch, bf16 preds, multi-tile reduction axis ------
    B2, E2 = 5000, 1
    kk = jax.random.split(jax.random.PRNGKey(1), 5)
    preds2 = (jax.random.uniform(kk[0], (B2, E2), jnp.float32) * 10.0
              ).astype(jnp.bfloat16)
    refs2 = jnp.concatenate([
        jnp.floor(jax.random.uniform(kk[1], (B2, E2), jnp.float32) * 4.0),
        (jax.random.uniform(kk[2], (B2, E2), jnp.float32) > 0.5
         ).astype(jnp.float32),
        jax.random.uniform(kk[3], (B2, E2), jnp.float32),
        jax.random.uniform(kk[4], (B2, E2), jnp.float32) * 12.0,
    ], axis=1)
    w2 = jnp.ones((E2 + 1,), jnp.float32)

    loss2 = jax.block_until_ready(l1_loss_hinge(preds2, refs2, w2, tr_max=32))
    ref2 = _reference_l1_hinge(preds2.astype(jnp.float32), refs2, w2)
    assert jnp.allclose(loss2, ref2, rtol=1e-4, atol=1e-4), (loss2, ref2)

    print("KERNEL_OK")
</pallas_src>

<mosaic_0001>
module attributes {stable_mosaic.version = 11 : i64} {
  func.func @_l1_hinge_kernel(%arg0: i32, %arg1: i32, %arg2: i32, %arg3: memref<1x32x128xf32, #tpu.memory_space<vmem>>, %arg4: memref<1x32x128xf32, #tpu.memory_space<vmem>>, %arg5: memref<1x32x128xf32, #tpu.memory_space<vmem>>, %arg6: memref<1x1x1x128xf32, #tpu.memory_space<vmem>>, %arg7: memref<32x128xf32, #tpu.memory_space<vmem>>) attributes {dimension_semantics = [#tpu.dimension_semantics<arbitrary>, #tpu.dimension_semantics<arbitrary>, #tpu.dimension_semantics<arbitrary>], iteration_bounds = array<i64: 1, 2, 1>, scalar_prefetch = 0 : i64, scratch_operands = 1 : i64, tpu.core_type = #tpu.core_type<tc>, window_params = [{transform_indices = @transform_0, window_bounds = array<i64: 1, 32, 128>}, {transform_indices = @transform_1, window_bounds = array<i64: 1, 32, 128>}, {transform_indices = @transform_2, window_bounds = array<i64: 1, 32, 128>}, {transform_indices = @transform_3, window_bounds = array<i64: 1, 1, 1, 128>}]} {
    %c0_i32 = arith.constant 0 : i32
    %0 = arith.cmpi eq, %arg2, %c0_i32 : i32
    %1 = arith.extui %0 : i1 to i32
    %c0_i32_0 = arith.constant 0 : i32
    %2 = arith.cmpi ne, %1, %c0_i32_0 : i32
    scf.if %2 {
      %cst_16 = arith.constant 0.000000e+00 : f32
      %22 = vector.broadcast %cst_16 : f32 to vector<32x128xf32>
      %c0_17 = arith.constant 0 : index
      %c0_18 = arith.constant 0 : index
      %23 = vector.load %arg7[%c0_17, %c0_18] : memref<32x128xf32, #tpu.memory_space<vmem>>, vector<32x128xf32>
      tpu.vector_store %arg7[%c0_17, %c0_18], %22 {strides = array<i32>} : memref<32x128xf32, #tpu.memory_space<vmem>>, vector<32x128xf32>,
    } else {
    }
    %c0 = arith.constant 0 : index
    %c0_1 = arith.constant 0 : index
    %c0_2 = arith.constant 0 : index
    %3 = vector.load %arg3[%c0, %c0_1, %c0_2] : memref<1x32x128xf32, #tpu.memory_space<vmem>>, vector<1x32x128xf32>
    %4 = vector.shape_cast %3 : vector<1x32x128xf32> to vector<32x128xf32>
    %c0_3 = arith.constant 0 : index
    %c0_4 = arith.constant 0 : index
    %c0_5 = arith.constant 0 : index
    %5 = vector.load %arg5[%c0_3, %c0_4, %c0_5] : memref<1x32x128xf32, #tpu.memory_space<vmem>>, vector<1x32x128xf32>
    %6 = vector.shape_cast %5 : vector<1x32x128xf32> to vector<32x128xf32>
    %c0_6 = arith.constant 0 : index
    %c0_7 = arith.constant 0 : index
    %c0_8 = arith.constant 0 : index
    %7 = vector.load %arg4[%c0_6, %c0_7, %c0_8] : memref<1x32x128xf32, #tpu.memory_space<vmem>>, vector<1x32x128xf32>
    %8 = vector.shape_cast %7 : vector<1x32x128xf32> to vector<32x128xf32>
    %cst = arith.constant 5.000000e-01 : f32
    %9 = vector.broadcast %cst : f32 to vector<32x128xf32>
    %10 = arith.cmpf ogt, %8, %9 : vector<32x128xf32>
    %11 = arith.subf %6, %4 : vector<32x128xf32>
    %c0_9 = arith.constant 0 : index
    %c0_10 = arith.constant 0 : index
    %12 = vector.load %arg7[%c0_9, %c0_10] : memref<32x128xf32, #tpu.memory_space<vmem>>, vector<32x128xf32>
    %13 = math.absf %11 : vector<32x128xf32>
    %cst_11 = arith.constant 0.000000e+00 : f32
    %14 = vector.broadcast %cst_11 : f32 to vector<32x128xf32>
    %15 = arith.maximumf %11, %14 : vector<32x128xf32>
    %16 = arith.select %10, %13, %15 : vector<32x128xi1>, vector<32x128xf32>
    %17 = arith.addf %12, %16 : vector<32x128xf32>
    %c0_12 = arith.constant 0 : index
    %c0_13 = arith.constant 0 : index
    %18 = vector.load %arg7[%c0_12, %c0_13] : memref<32x128xf32, #tpu.memory_space<vmem>>, vector<32x128xf32>
    tpu.vector_store %arg7[%c0_12, %c0_13], %17 {strides = array<i32>} : memref<32x128xf32, #tpu.memory_space<vmem>>, vector<32x128xf32>,
    %c0_i32_14 = arith.constant 0 : i32
    %19 = arith.cmpi eq, %arg2, %c0_i32_14 : i32
    %20 = arith.extui %19 : i1 to i32
    %c0_i32_15 = arith.constant 0 : i32
    %21 = arith.cmpi ne, %20, %c0_i32_15 : i32
    scf.if %21 {
      %c0_16 = arith.constant 0 : index
      %c0_17 = arith.constant 0 : index
      %22 = vector.load %arg7[%c0_16, %c0_17] : memref<32x128xf32, #tpu.memory_space<vmem>>, vector<32x128xf32>
      %cst_18 = arith.constant dense<0.000000e+00> : vector<128xf32>
      %23 = vector.multi_reduction <add>, %22, %cst_18 [0] : vector<32x128xf32> to vector<128xf32>
      %24 = vector.shape_cast %23 : vector<128xf32> to vector<1x128xf32>
      %c0_19 = arith.constant 0 : index
      %c0_20 = arith.constant 0 : index
      %c0_21 = arith.constant 0 : index
      %c0_22 = arith.constant 0 : index
      %25 = vector.load %arg6[%c0_19, %c0_20, %c0_21, %c0_22] : memref<1x1x1x128xf32, #tpu.memory_space<vmem>>, vector<1x1x1x128xf32>
      %26 = vector.shape_cast %25 : vector<1x1x1x128xf32> to vector<1x128xf32>
      %27 = vector.shape_cast %24 : vector<1x128xf32> to vector<1x1x1x128xf32>
      tpu.vector_store %arg6[%c0_19, %c0_20, %c0_21, %c0_22], %27 {strides = array<i32>} : memref<1x1x1x128xf32, #tpu.memory_space<vmem>>, vector<1x1x1x128xf32>,
    } else {
    }
    return
  }
  func.func @transform_0(%arg0: i32, %arg1: i32, %arg2: i32) -> (i32, i32, i32) {
    %c1_i32 = arith.constant 1 : i32
    %0 = arith.muli %arg0, %c1_i32 : i32
    %1 = arith.addi %0, %arg2 : i32
    %c0_i32 = arith.constant 0 : i32
    %c0_i32_0 = arith.constant 0 : i32
    return %arg1, %1, %c0_i32 : i32, i32, i32
  }
  func.func @transform_1(%arg0: i32, %arg1: i32, %arg2: i32) -> (i32, i32, i32) {
    %c1_i32 = arith.constant 1 : i32
    %0 = arith.muli %arg0, %c1_i32 : i32
    %1 = arith.addi %0, %arg2 : i32
    %c0_i32 = arith.constant 0 : i32
    %c0_i32_0 = arith.constant 0 : i32
    return %arg1, %1, %c0_i32 : i32, i32, i32
  }
  func.func @transform_2(%arg0: i32, %arg1: i32, %arg2: i32) -> (i32, i32, i32) {
    %c1_i32 = arith.constant 1 : i32
    %0 = arith.muli %arg0, %c1_i32 : i32
    %1 = arith.addi %0, %arg2 : i32
    %c0_i32 = arith.constant 0 : i32
    %c0_i32_0 = arith.constant 0 : i32
    return %arg1, %1, %c0_i32 : i32, i32, i32
  }
  func.func @transform_3(%arg0: i32, %arg1: i32, %arg2: i32) -> (i32, i32, i32, i32) {
    %c0_i32 = arith.constant 0 : i32
    %c0_i32_0 = arith.constant 0 : i32
    %c0_i32_1 = arith.constant 0 : i32
    return %arg0, %arg1, %c0_i32, %c0_i32_0 : i32, i32, i32, i32
  }
}

</mosaic_0001>

<bundles_post_ra>
// kernel: tpu_custom_call.1
= control target key start
LH: loop header
LB: loop body
LE: loop exit
PB: predicated region body
PF: predicated region fallthrough
CT: control target
= control target key end

     0   :  { %s1109_s0 = inlined_call_operand.hbm [shape: f32[2,32,128], index: 0, kind: input, shape index: {}]   ;;  %s1110_s1 = inlined_call_operand.hbm [shape: f32[2,32,128], index: 1, kind: input, shape index: {}]   ;;  %s1111_s2 = inlined_call_operand.hbm [shape: f32[2,32,128], index: 2, kind: input, shape index: {}]   ;;  %s1112_s3 = inlined_call_operand.hbm [shape: f32[1,2,1,128], index: 3, kind: output, shape index: {}]  }
   0x1   :  { %1122 = sst [smem:[#allocation16_spill]] %s1110_s1 }
   0x2   :  { %8 = vsyncpa [#allocation4], 0 }
   0x3   :  { %10 = vsyncpa [#allocation4 + $0x1], 0 }
   0x4   :  { %11 = vsyncpa [#allocation7], 0 }
   0x5   :  { %13 = vsyncpa [#allocation7 + $0x1], 0 }
   0x6   :  { %14 = vsyncpa [#allocation5], 0 }
   0x7   :  { %16 = vsyncpa [#allocation5 + $0x1], 0  ;;  %s832_s12 = smov 0   ;;  %s834_s13 = smov 0  }
   0x8   :  { %s836_s14 = smov 0   ;;  %s838_s15 = smov 0  }
   0x9   :  { %s840_s16 = smov 0   ;;  %s842_s17 = smov 0  }
   0xa LB: > { %1123 = sst [smem:[#allocation13_spill]] %s800_s16  ;;  %s863_s18 = sadd.s32 4294967295, %s804_s17   ;;  %s804_s17 = sphi %s842_s17, %s22_s17   ;;  %s800_s16 = sphi %s840_s16, %s1146_s16   ;;  %s796_s15 = sphi %s838_s15, %s1145_s15   ;;  %s792_s14 = sphi %s836_s14, %s1149_s14   ;;  %s788_s13 = sphi %s834_s13, %s1148_s13   ;;  %s784_s12 = sphi %s832_s12, %s1147_s12  }
   0xb   : > { %s532_s19 = sadd.s32 4294967294, %s804_s17   ;;  %s37_s20 = sadd.s32 1, %s800_s16 }
   0xc   : > { %s52_s21 = sadd.s32 1, %s792_s14  ;;  %p39_p0 = scmp.ge.s32.totalorder %s37_s20, 2 }
   0xd   : > { %p59_p1 = scmp.ne.s32.totalorder %s792_s14, %s788_s13  ;;  %p60_p2 = scmp.eq.s32.totalorder %s804_s17, 0 }
   0xe   : > { %p65_p3 = scmp.ne.s32.totalorder %s788_s13, %s784_s12  ;;  %s1151_s20 = smov (%p39_p0, %s37_s20), 0 }
   0xf   : > { %1124 = sst [smem:[#allocation14_spill]] %s1151_s20  ;;  %p875_p4 = por %p60_p2, %p59_p1 }
  0x10   : > { %p66_p5 = scmp.eq.s32.totalorder %s863_s18, 0  ;;  %s47_s23 = ssub.s32 %s800_s16, %s1151_s20 }
  0x11   : > { %p151_p6 = scmp.eq.s32.totalorder %s863_s18, 1  ;;  %p50_p7 = scmp.eq.s32.totalorder %s47_s23, 0 }
  0x12   : > { %p883_p8 = por %p66_p5, %p65_p3  ;;  %p157_p10 = scmp.eq.s32.totalorder %s532_s19, 1 }
  0x13   : > { %p887_p9 = por %p151_p6, %p59_p1  ;;  %p576_p13 = scmp.lt.s32.totalorder %s804_s17, 2 }
  0x14   : > { %s1126_s24 = scalar_select %p883_p8, 1, 0 }
  0x15   : > { %s1127_s25 = scalar_select %p887_p9, 1, 0 }
  0x16   : > { %s892_s26 = scalar_select %p50_p7, %s792_s14, %s52_s21  }
  0x17   : > { %p894_p11 = por %p157_p10, %p65_p3  ;;  %s1115_s28 = sand.u32 1, %s792_s14  }
  0x18   : > { %1128 = sst [smem:[#allocation15_spill]] %s892_s26  ;;  %s903_s29 = sshll.u32 %s1115_s28, 5 }
  0x19   : > { %s1129_s27 = scalar_select %p894_p11, 1, 0 }
  0x1a   : > { %s906_s30 = sshll.u32 %s800_s16, 9  ;;  %p910_p0 = pnand %p576_p13, %p875_p4 }
  0x1b   : > { %s201_s5 = sand.u32 1, %s804_s17   ;;  %s1131_s1 = sld [smem:[#allocation16_spill]] }
  0x1c   : > { %s205_s9 = scalar_lea.vmem [#allocation6], %s903_s29  ;;  %s926_s11 = scalar_lea.sflag [#allocation7], %s201_s5 }
  0x1d   : > { %s215_s10 = sshll.u32 %s205_s9, 4  ;;  %p932_p4 = pneg %p910_p0  ;;  %s923_s10 = int_to_ptr.vmem [resolvable:$true] %s215_s10 }
  0x21   : > { %s919_s8 = scalar_lea.hbm %s1131_s1, %s906_s30  ;;  %s633_s6 = scalar_lea.hbm %s1131_s1, 1024 }
  0x22   : > { %s628_s19 = scalar_lea.hbm %s919_s8, 512  ;;  %p634_p7 = scmp.lt.u32.totalorder %s919_s8, %s1131_s1 }
  0x23   : > { %p629_p3 = scmp.ne.s32.totalorder %s919_s8, %s628_s19  ;;  %p635_p10 = scmp.lt.u32.totalorder %s633_s6, %s628_s19 }
  0x24   : > { %p637_p12 = scmp.lt.u32.totalorder %s628_s19, %s919_s8 }
  0x25   : > { %p631_p5 = pnand %p932_p4, %p629_p3  ;;  %p636_p13 = por %p635_p10, %p634_p7 }
  0x27   : > { %p632_p6 = pneg %p631_p5  ;;  %p638_p1 = por %p637_p12, %p636_p13 }
  0x29   : > { %p639_p2 = pnand %p638_p1, %p632_p6 }
  0x2b   : > { %642 = shalt.err (!%p639_p2)
}
  0x2c   : > { %s643_s5 = scalar_lea.vmem %s923_s10, 512  ;;  %s806_s22 = smov [#allocation6]  }
  0x2d   : > { %p644_p3 = scmp.ne.s32.totalorder %s923_s10, %s643_s5  ;;  %s648_s23 = sshll.u32 %s806_s22, 4  ;;  %s649_s23 = int_to_ptr.vmem [resolvable:$false] %s648_s23 }
  0x2e   : > { %s650_s7 = scalar_lea.vmem %s649_s23, 1024  ;;  %p651_p9 = scmp.lt.s32.totalorder %s923_s10, %s649_s23 }
  0x2f   : > { %p646_p5 = pnand %p644_p3, %p932_p4  ;;  %p652_p8 = scmp.lt.s32.totalorder %s650_s7, %s643_s5 }
  0x31   : > { %p647_p11 = pneg %p646_p5  ;;  %p653_p7 = por %p652_p8, %p651_p9 }
  0x33   : > { %p654_p10 = pnand %p653_p7, %p647_p11 }
  0x35   : > { %657 = shalt.err (!%p654_p10)
}
  0x36   : > { %s1116_s19 = smov 128   ;;  %s1118_s6 = smov 8  }
  0x37   : > { %568 = dma.hbm_to_vmem [thread:$0]  (!%p910_p0), %s919_s8, 512, %s923_s10, %s926_s11, %s1116_s19, %s1116_s19, %s1118_s6  }
  0x38   : > { %p1133_p8 = scmp.lt.s32.totalorder %s804_s17, 3  ;;  %p1134_p9 = scmp.ge.s32.totalorder %s804_s17, 1 }
  0x39   : > { %s971_s23 = scalar_lea.hbm %s1109_s0, %s906_s30  ;;  %s181_s7 = scalar_lea.vmem [#allocation3], %s903_s29 }
  0x3a   : > { %p963_p11 = pnand %p1134_p9, %p1133_p8  ;;  %s191_s28 = sshll.u32 %s181_s7, 4  ;;  %s974_s28 = int_to_ptr.vmem [resolvable:$true] %s191_s28 }
  0x3b   : > { %s980_s19 = scalar_lea.hbm %s1111_s2, %s906_s30  ;;  %s1136_s6 = sand.u32 1, %s792_s14  }
  0x3c   : > { %s1135_s9 = scalar_select %p963_p11, 1, 0 }
  0x3d   : > { %s984_s1 = scalar_lea.sflag [#allocation4], %s1136_s6  ;;  %s658_s20 = scalar_lea.hbm %s971_s23, 512 }
  0x3e   : > { %p659_p12 = scmp.ne.s32.totalorder %s971_s23, %s658_s20  ;;  %s663_s16 = scalar_lea.hbm %s1109_s0, 1024 }
  0x3f   : > { %p664_p6 = scmp.lt.u32.totalorder %s971_s23, %s1109_s0  ;;  %p665_p13 = scmp.lt.u32.totalorder %s663_s16, %s658_s20 }
  0x40   : > { %p661_p1 = pnand %p659_p12, %p932_p4  ;;  %p667_p5 = scmp.lt.u32.totalorder %s658_s20, %s971_s23 }
  0x41   : > { %p666_p3 = por %p665_p13, %p664_p6 }
  0x42   : > { %p662_p2 = pneg %p661_p1 }
  0x43   : > { %p668_p7 = por %p667_p5, %p666_p3 }
  0x45   : > { %p669_p10 = pnand %p668_p7, %p662_p2 }
  0x47   : > { %672 = shalt.err (!%p669_p10)
}
  0x48   : > { %s673_s30 = scalar_lea.vmem %s974_s28, 512  ;;  %s809_s6 = smov [#allocation3]  }
  0x49   : > { %p674_p8 = scmp.ne.s32.totalorder %s974_s28, %s673_s30  ;;  %s678_s8 = sshll.u32 %s809_s6, 4  ;;  %s679_s8 = int_to_ptr.vmem [resolvable:$false] %s678_s8 }
  0x4a   : > { %s680_s26 = scalar_lea.vmem %s679_s8, 1024  ;;  %p681_p1 = scmp.lt.s32.totalorder %s974_s28, %s679_s8 }
  0x4b   : > { %p676_p9 = pnand %p674_p8, %p932_p4  ;;  %p682_p11 = scmp.lt.s32.totalorder %s680_s26, %s673_s30 }
  0x4d   : > { %p677_p12 = pneg %p676_p9  ;;  %p683_p6 = por %p682_p11, %p681_p1 }
  0x4f   : > { %p684_p13 = pnand %p683_p6, %p677_p12 }
  0x51   : > { %687 = shalt.err (!%p684_p13)
}
  0x52   : > { %s1137_s16 = smov 8   ;;  %s1138_s20 = smov 128  }
  0x53   : > { %565 = dma.hbm_to_vmem [thread:$0]  (!%p910_p0), %s971_s23, 512, %s974_s28, %s984_s1, %s1138_s20, %s1138_s20, %s1137_s16  }
  0x54   : > { %s229_s10 = scalar_lea.vmem [#allocation8], %s903_s29  ;;  %s688_s22 = scalar_lea.hbm %s980_s19, 512 }
  0x55   : > { %s239_s5 = sshll.u32 %s229_s10, 4  ;;  %p689_p11 = scmp.ne.s32.totalorder %s980_s19, %s688_s22  ;;  %s1012_s5 = int_to_ptr.vmem [resolvable:$true] %s239_s5 }
  0x56   : > { %s693_s6 = scalar_lea.hbm %s1111_s2, 1024  ;;  %p694_p5 = scmp.lt.u32.totalorder %s980_s19, %s1111_s2 }
  0x57   : > { %p691_p2 = pnand %p689_p11, %p932_p4  ;;  %p695_p7 = scmp.lt.u32.totalorder %s693_s6, %s688_s22 }
  0x58   : > { %p697_p8 = scmp.lt.u32.totalorder %s688_s22, %s980_s19 }
  0x59   : > { %p692_p3 = pneg %p691_p2  ;;  %p696_p10 = por %p695_p7, %p694_p5 }
  0x5b   : > { %p698_p9 = por %p697_p8, %p696_p10 }
  0x5d   : > { %p699_p12 = pnand %p698_p9, %p692_p3 }
  0x5f   : > { %702 = shalt.err (!%p699_p12)
}
  0x60   : > { %s703_s1 = scalar_lea.vmem %s1012_s5, 512  ;;  %s810_s28 = smov [#allocation8]  }
  0x61   : > { %p704_p1 = scmp.ne.s32.totalorder %s1012_s5, %s703_s1  ;;  %s708_s29 = sshll.u32 %s810_s28, 4  ;;  %s709_s29 = int_to_ptr.vmem [resolvable:$false] %s708_s29 }
  0x62   : > { %s710_s23 = scalar_lea.vmem %s709_s29, 1024  ;;  %p711_p11 = scmp.lt.s32.totalorder %s1012_s5, %s709_s29 }
  0x63   : > { %p706_p6 = pnand %p704_p1, %p932_p4  ;;  %p712_p2 = scmp.lt.s32.totalorder %s710_s23, %s703_s1 }
  0x65   : > { %p707_p13 = pneg %p706_p6  ;;  %p713_p5 = por %p712_p2, %p711_p11 }
  0x67   : > { %p714_p7 = pnand %p713_p5, %p707_p13 }
  0x69   : > { %717 = shalt.err (!%p714_p7)
}
  0x6a   : > { %571 = dma.hbm_to_vmem [thread:$0]  (!%p910_p0), %s980_s19, 512, %s1012_s5, %s926_s11, %s1138_s20, %s1138_s20, %s1137_s16  }
  0x6b   : > { %p1139_p4 = scmp.ne.s32.totalorder %s1135_s9, 0 }
  0x6c   : > { %s1042_s21 = sand.u32 (!%p1139_p4), 1, %s788_s13   ;;  %p1140_p3 = scmp.ne.s32.totalorder (!%p1139_p4), %s1126_s24, 0 }
  0x6d   : > { %251 = sbr.rel (%p1139_p4) target bundleno = 161 (0xa1), region = 32  ;;  %s545_s10 = sshll.u32 (!%p1139_p4), %s1042_s21, 5 }
  0x6e   : > { %s254_s22 = scalar_lea.sflag (!%p1139_p4), [#allocation4], %s1042_s21  ;;  %s257_s7 = scalar_lea.vmem (!%p1139_p4), [#allocation3], %s545_s10 }
  0x74   : > { %771 = dma.done.wait (%p1140_p3), %s254_s22, 512  }
  0x75   : > { %773 = vsyncadd (%p1140_p3), %s254_s22, 4294966784  ;;  %s262_s4 = sand.u32 1, %s863_s18   ;;  %s266_s19 = scalar_lea.vmem [#allocation6], %s545_s10 }
  0x76   : > { %s263_s11 = scalar_lea.sflag [#allocation7], %s262_s4 }
  0x77   : > { %775 = dma.done.wait (%p1140_p3), %s263_s11, 1024  }
  0x78   : > { %777 = vsyncadd (%p1140_p3), %s263_s11, 4294966272  ;;  %v321_v0 = vld [vmem:[%s257_s7] sm:$0xff]  ;;  %v322_v1 = vld [vmem:[%s257_s7 + $0x8] sm:$0xff]  ;;  %s275_s9 = scalar_lea.vmem [#allocation8], %s545_s10  ;;  %s306_s18 = scalar_lea.vmem [#allocation9], %s1042_s21 }
  0x79   : > { %v323_v2 = vld [vmem:[%s257_s7 + $0x10] sm:$0xff]  ;;  %v324_v3 = vld [vmem:[%s257_s7 + $0x18] sm:$0xff]  ;;  %v325_v4 = vld [vmem:[%s275_s9] sm:$0xff]  ;;  %s397_s24 = sshll.u32 %s306_s18, 4  ;;  %s548_s16 = sshll.u32 %s796_s15, 4  ;;  %s1057_s24 = int_to_ptr.vmem [resolvable:$true] %s397_s24 }
  0x7a   : > { %v326_v5 = vld [vmem:[%s275_s9 + $0x8] sm:$0xff]  ;;  %v327_v6 = vld [vmem:[%s275_s9 + $0x10] sm:$0xff]  ;;  %v328_v7 = vld [vmem:[%s275_s9 + $0x18] sm:$0xff]  ;;  %v337_v9 = vsub.f32 %v325_v4, %v321_v0  ;;  %s1062_s30 = scalar_lea.hbm %s1112_s3, %s548_s16  ;;  %s383_s6 = scalar_lea.sflag [#allocation5], %s1042_s21 }
  0x7b   : > { %v329_v8 = vld [vmem:[%s266_s19] sm:$0xff]  ;;  %v338_v10 = vsub.f32 %v326_v5, %v322_v1  ;;  %v330_v11 = vld [vmem:[%s266_s19 + $0x8] sm:$0xff]  ;;  %v331_v12 = vld [vmem:[%s266_s19 + $0x10] sm:$0xff]  ;;  %v339_v13 = vsub.f32 %v327_v6, %v323_v2  ;;  %v340_v14 = vsub.f32 %v328_v7, %v324_v3  ;;  %s718_s8 = scalar_lea.vmem %s1057_s24, 16  ;;  %p1141_p10 = scmp.ne.s32.totalorder %s1127_s25, 0 }
  0x7c   : > { %v332_v15 = vld [vmem:[%s266_s19 + $0x18] sm:$0xff]  ;;  %vm333_vm0 = vcmp.gt.f32.partialorder %v329_v8, 0.5  ;;  %vm334_vm1 = vcmp.gt.f32.partialorder %v330_v11, 0.5  ;;  %vm335_vm2 = vcmp.gt.f32.partialorder %v331_v12, 0.5  ;;  %v345_v16 = vand.u32 2147483647, %v337_v9  ;;  %p719_p0 = scmp.ne.s32.totalorder %s1057_s24, %s718_s8 }
  0x7d   : > { %v346_v17 = vand.u32 2147483647, %v338_v10  ;;  %v347_v18 = vand.u32 2147483647, %v339_v13  ;;  %v348_v19 = vand.u32 2147483647, %v340_v14 }
  0x7e   : > { %v349_v20 = vmax.f32 %v337_v9, 0.0  ;;  %v350_v21 = vmax.f32 %v338_v10, 0.0  ;;  %v351_v22 = vmax.f32 %v339_v13, 0.0  ;;  %v352_v23 = vmax.f32 %v340_v14, 0.0  ;;  %p720_p8 = pnand %p719_p0, %p1141_p10  ;;  %s811_s15 = smov [#allocation9]  }
  0x7f   : > { %vm336_vm3 = vcmp.gt.f32.partialorder %v332_v15, 0.5  ;;  %s722_s26 = sshll.u32 %s811_s15, 4  ;;  %s723_s26 = int_to_ptr.vmem [resolvable:$false] %s722_s26 }
  0x80   : > { %v353_v24 = vsel %vm333_vm0, %v345_v16, %v349_v20  ;;  %v354_v25 = vsel %vm334_vm1, %v346_v17, %v350_v21  ;;  %v355_v26 = vsel %vm335_vm2, %v347_v18, %v351_v22  ;;  %v356_v28 = vsel %vm336_vm3, %v348_v19, %v352_v23  ;;  %p721_p9 = pneg %p720_p8  ;;  %s724_s1 = scalar_lea.vmem %s723_s26, 32 }
  0x81   : > { %v372_v27 = vadd.f32 %v354_v25, %v353_v24  ;;  %p725_p12 = scmp.lt.s32.totalorder %s1057_s24, %s723_s26  ;;  %p726_p1 = scmp.lt.s32.totalorder %s724_s1, %s718_s8 }
  0x83   : > { %v373_v29 = vadd.f32 %v372_v27, %v355_v26  ;;  %p727_p6 = por %p726_p1, %p725_p12 }
  0x85   : > { %v374_v30 = vadd.f32 %v373_v29, %v356_v28  ;;  %p728_p13 = pnand %p727_p6, %p721_p9 }
  0x87   : > { %v375_v31 = vrot.slane %v374_v30, 4 }
  0x89   : > { %v376_v32 = vadd.f32 %v375_v31, %v374_v30 }
  0x8b   : > { %v377_v33 = vrot.slane %v376_v32, 2 }
  0x8d   : > { %v378_v34 = vadd.f32 %v377_v33, %v376_v32 }
  0x8f   : > { %v379_v35 = vrot.slane %v378_v34, 1 }
  0x91   : > { %v380_v36 = vadd.f32 %v379_v35, %v378_v34 }
  0x93   : > { %381 = vst [vmem:[%s306_s18] sm:$0x1] %v380_v36 }
  0x94   : > { %731 = shalt.err (!%p728_p13)
}
  0x95   : > { %s732_s28 = scalar_lea.hbm %s1062_s30, 16  ;;  %s736_s21 = scalar_lea.hbm %s1112_s3, 32 }
  0x96   : > { %p733_p11 = scmp.ne.s32.totalorder %s1062_s30, %s732_s28  ;;  %p737_p7 = scmp.lt.u32.totalorder %s1062_s30, %s1112_s3 }
  0x97   : > { %p738_p4 = scmp.lt.u32.totalorder %s736_s21, %s732_s28  ;;  %p740_p0 = scmp.lt.u32.totalorder %s732_s28, %s1062_s30 }
  0x98   : > { %p734_p2 = pnand %p733_p11, %p1141_p10 }
  0x99   : > { %p739_p3 = por %p738_p4, %p737_p7 }
  0x9a   : > { %p735_p5 = pneg %p734_p2 }
  0x9b   : > { %p741_p8 = por %p740_p0, %p739_p3 }
  0x9d   : > { %p742_p9 = pnand %p741_p8, %p735_p5 }
  0x9f   : > { %745 = shalt.err (!%p742_p9)
}
  0xa0   : > { %560 = dma.vmem_to_hbm [thread:$0]  (%p1141_p10), %s1057_s24, 16, %s1062_s30, %s383_s6  }
  0xa1 PF: > { %s409_s7 = sand.u32 1, %s784_s12   ;;  %p1142_p12 = scmp.ne.s32.totalorder %s1129_s27, 0 }
  0xa2   : > { %p1143_p1 = scmp.ge.s32.totalorder %s804_s17, 2  ;;  %s410_s4 = scalar_lea.sflag [#allocation5], %s409_s7 }
  0xa4   : > { %p573_p6 = pnand %p1143_p1, %p1142_p12 }
  0xa6   : > { %779 = dma.done.wait (!%p573_p6), %s410_s4, 16  }
  0xa7   : > { %781 = vsyncadd (!%p573_p6), %s410_s4, 4294967280  ;;  %s22_s17 = sadd.s32 1, %s804_s17   ;;  %s1144_s25 = sld [smem:[#allocation15_spill]] }
  0xa8   : > { %p19_p13 = scmp.ge.s32.totalorder %s22_s17, 4   ;;  %s1145_s15 = sld [smem:[#allocation13_spill]] }
  0xa9   : > { %s1146_s16 = sld [smem:[#allocation14_spill]]  ;;  %s1147_s12 = smov %s788_s13 }
  0xaa   : > { %s1148_s13 = smov %s792_s14  ;;  %21 = sbr.rel (!%p19_p13) target bundleno = 10 (0xa), region = 109 }
  0xad   : > { %s1149_s14 = smov %s1144_s25 }
  0xb1   :  { %414 = vsyncpa [#allocation4], 1 }
  0xb2   :  { %416 = vsyncpa [#allocation4 + $0x1], 1 }
  0xb3   :  { %417 = vsyncpa [#allocation7], 1 }
  0xb4   :  { %419 = vsyncpa [#allocation7 + $0x1], 1 }
  0xb5   :  { %420 = vsyncpa [#allocation5], 1 }
  0xb6   :  { %422 = vsyncpa [#allocation5 + $0x1], 1 }

</bundles_post_ra>
